<compile_context>
chip_gen: v6e
topology: v6e:2x2x1
jax: 0.10.0
libtpu: 0.0.40
codegen_flags: <defaults>
</compile_context>

<pallas_src>
import jax
import jax.numpy as jnp
from jax.experimental import pallas as pl
from jax.experimental.pallas import tpu as pltpu

_VMEM_LIMIT = 32 * 1024 * 1024
_TARGET_BLOCK_BYTES = 2 * 1024 * 1024   # ~2 MiB / block ~= 85%+ of HBM roofline


def _h_sigmoid_kernel(x_ref, o_ref):
    x = x_ref[...]
    # relu6(x + 3) / 6  ==  clip(x + 3, 0, 6) * (1/6)
    o_ref[...] = (jnp.clip(x + 3.0, 0.0, 6.0) * (1.0 / 6.0)).astype(o_ref.dtype)


def _pick_width(n: int) -> int:
    """Largest lane-dense width (multiple of 128) that divides n exactly,
    preferring widths that leave >= 8 rows (full sublane packing).
    Returns 0 if no multiple of 128 divides n (ragged -> pad path)."""
    divisors = [w for w in (1024, 512, 256, 128) if n % w == 0]
    if not divisors:
        return 0
    for w in divisors:          # descending: first hit is the largest such w
        if n // w >= 8:
            return w
    return divisors[0]


def h_sigmoid(x: jax.Array, *, min_pallas_elems: int = 0) -> jax.Array:
    """Elementwise hard-sigmoid matching torch: relu6(x+3)/6. Any shape/dtype.

    `min_pallas_elems`: optional threshold below which we fall back to plain
    jnp (a standalone Pallas call can't amortize launch overhead on tiny
    tensors). Default 0 so the Pallas path is always exercised here.
    """
    orig_shape, orig_dtype = x.shape, x.dtype
    n = x.size
    if n == 0:
        return x
    if n < min_pallas_elems:
        return (jnp.clip(x + 3.0, 0.0, 6.0) * (1.0 / 6.0)).astype(orig_dtype)

    # ---- flatten to a lane-dense (rows, width) slab -------------------------
    flat = x.reshape(-1)                      # metadata-only for dense row-major
    width = _pick_width(n)
    padded = False
    if width == 0:
        # Ragged size (not a multiple of 128): pad once to a 1024-wide slab.
        # This is the only path with extra HBM traffic (pad + unpad copies).
        width = 1024
        rows = pl.cdiv(n, width)
        flat = jnp.pad(flat, (0, rows * width - n))
        padded = True
    else:
        rows = n // width
    slab = flat.reshape(rows, width)

    # ---- block sizing: ~2 MiB per block, sublane-aligned, full if short -----
    itemsize = jnp.dtype(orig_dtype).itemsize
    tile_rows = max(_TARGET_BLOCK_BYTES // (width * itemsize), 8)
    tile_rows = (tile_rows // 8) * 8
    if tile_rows >= rows:
        tile_rows = rows                      # full-extent block (always legal)
    grid = (pl.cdiv(rows, tile_rows),)        # last block may be partial (masked)

    out = pl.pallas_call(
        _h_sigmoid_kernel,
        out_shape=jax.ShapeDtypeStruct((rows, width), orig_dtype),
        grid=grid,
        in_specs=[pl.BlockSpec((tile_rows, width), lambda i: (i, 0))],
        out_specs=pl.BlockSpec((tile_rows, width), lambda i: (i, 0)),
        compiler_params=pltpu.CompilerParams(
            dimension_semantics=("parallel",),   # v7x: shard grid across both TCs
            vmem_limit_bytes=_VMEM_LIMIT,
        ),
    )(slab)

    # ---- restore original shape (un-pad only if we padded) ------------------
    if padded:
        out = out.reshape(-1)[:n]
    return out.reshape(orig_shape)


def _ref(x):
    return jnp.clip(x + 3.0, 0.0, 6.0) / 6.0


if __name__ == "__main__":
    key = jax.random.PRNGKey(0)
    hs = jax.jit(h_sigmoid)

    # 1) Spec shape from the module's typical use: NCHW, batch=2, channels=4, 16x16.
    #    n = 2048 -> copy-free reshape to (8, 256): fully packed vregs, no padding.
    x = jax.random.normal(key, (2, 4, 16, 16), dtype=jnp.float32) * 4.0
    y = hs(x)
    jax.block_until_ready(y)
    assert y.shape == x.shape and y.dtype == x.dtype
    assert jnp.allclose(y, _ref(x), atol=1e-6), "mismatch vs reference (spec shape)"

    # 2) Ragged shape (4845 elems): exercises the pad + un-pad fallback path.
    x2 = jax.random.normal(jax.random.PRNGKey(1), (3, 5, 17, 19), dtype=jnp.float32) * 4.0
    y2 = hs(x2)
    jax.block_until_ready(y2)
    assert y2.shape == x2.shape and y2.dtype == x2.dtype
    assert jnp.allclose(y2, _ref(x2), atol=1e-6), "mismatch vs reference (ragged shape)"

    # 3) Medium activation: 786432 elems -> (768, 1024) slab, 512-row tiles,
    #    2 grid steps with a partial (masked) last block -> pipelined multi-tile path.
    x3 = jax.random.normal(jax.random.PRNGKey(2), (2, 32, 96, 128), dtype=jnp.float32) * 4.0
    y3 = hs(x3)
    jax.block_until_ready(y3)
    assert y3.shape == x3.shape and y3.dtype == x3.dtype
    assert jnp.allclose(y3, _ref(x3), atol=1e-6), "mismatch vs reference (multi-tile)"

    # 4) bf16 activation: same kernel, native-dtype compute on the VPU.
    x4 = (jax.random.normal(jax.random.PRNGKey(3), (2, 8, 32, 128), dtype=jnp.float32) * 4.0
          ).astype(jnp.bfloat16)
    y4 = hs(x4)
    jax.block_until_ready(y4)
    assert y4.shape == x4.shape and y4.dtype == x4.dtype
    assert jnp.allclose(y4.astype(jnp.float32), _ref(x4).astype(jnp.float32),
                        atol=1e-2), "mismatch vs reference (bf16)"

    print("KERNEL_OK")
</pallas_src>

<mosaic_0001>
module attributes {stable_mosaic.version = 11 : i64} {
  func.func @_h_sigmoid_kernel(%arg0: i32, %arg1: memref<8x256xf32, #tpu.memory_space<vmem>>, %arg2: memref<8x256xf32, #tpu.memory_space<vmem>>) attributes {dimension_semantics = [#tpu.dimension_semantics<parallel>], iteration_bounds = array<i64: 1>, scalar_prefetch = 0 : i64, scratch_operands = 0 : i64, tpu.core_type = #tpu.core_type<tc>, window_params = [{transform_indices = @transform_0, window_bounds = array<i64: 8, 256>}, {transform_indices = @transform_1, window_bounds = array<i64: 8, 256>}]} {
    %c0 = arith.constant 0 : index
    %c0_0 = arith.constant 0 : index
    %0 = vector.load %arg1[%c0, %c0_0] : memref<8x256xf32, #tpu.memory_space<vmem>>, vector<8x256xf32>
    %cst = arith.constant 3.000000e+00 : f32
    %1 = vector.broadcast %cst : f32 to vector<8x256xf32>
    %2 = arith.addf %0, %1 : vector<8x256xf32>
    %cst_1 = arith.constant 0.000000e+00 : f32
    %cst_2 = arith.constant 6.000000e+00 : f32
    %3 = vector.broadcast %cst_1 : f32 to vector<8x256xf32>
    %4 = arith.maximumf %3, %2 : vector<8x256xf32>
    %5 = vector.broadcast %cst_2 : f32 to vector<8x256xf32>
    %6 = arith.minimumf %5, %4 : vector<8x256xf32>
    %cst_3 = arith.constant 0.166666672 : f32
    %7 = vector.broadcast %cst_3 : f32 to vector<8x256xf32>
    %8 = arith.mulf %6, %7 : vector<8x256xf32>
    %c0_4 = arith.constant 0 : index
    %c0_5 = arith.constant 0 : index
    %9 = vector.load %arg2[%c0_4, %c0_5] : memref<8x256xf32, #tpu.memory_space<vmem>>, vector<8x256xf32>
    tpu.vector_store %arg2[%c0_4, %c0_5], %8 {strides = array<i32>} : memref<8x256xf32, #tpu.memory_space<vmem>>, vector<8x256xf32>,
    return
  }
  func.func @transform_0(%arg0: i32) -> (i32, i32) {
    %c0_i32 = arith.constant 0 : i32
    %c0_i32_0 = arith.constant 0 : i32
    return %arg0, %c0_i32 : i32, i32
  }
  func.func @transform_1(%arg0: i32) -> (i32, i32) {
    %c0_i32 = arith.constant 0 : i32
    %c0_i32_0 = arith.constant 0 : i32
    return %arg0, %c0_i32 : i32, i32
  }
}

</mosaic_0001>

<bundles_post_ra>
// kernel: h_sigmoid.1
= control target key start
LH: loop header
LB: loop body
LE: loop exit
PB: predicated region body
PF: predicated region fallthrough
CT: control target
= control target key end

     0   :  { %s46_s0 = inlined_call_operand.vmem [shape: f32[8,256], index: 0, kind: input, shape index: {}]   ;;  %s47_s1 = inlined_call_operand.vmem [shape: f32[8,256], index: 1, kind: output, shape index: {}]  }
   0x1   :  { %v8_v0 = vld [vmem:[%s46_s0] sm:$0xff]  ;;  %v9_v1 = vld [vmem:[%s46_s0 + $0x8] sm:$0xff] }
   0x2   :  { %v10_v2 = vadd.f32 3.0, %v8_v0  ;;  %v11_v3 = vadd.f32 3.0, %v9_v1 }
   0x4   :  { %v12_v4 = vmax.f32 %v10_v2, 0.0  ;;  %v13_v5 = vmax.f32 %v11_v3, 0.0 }
   0x6   :  { %v14_v6 = vmin.f32 %v12_v4, 6.0  ;;  %v15_v7 = vmin.f32 %v13_v5, 6.0 }
   0x8   :  { %v16_v8 = vmul.f32 0.16666667, %v14_v6  ;;  %v17_v9 = vmul.f32 0.16666667, %v15_v7 }
   0xa   :  { %18 = vst [vmem:[%s47_s1] sm:$0xff] %v16_v8  ;;  %19 = vst [vmem:[%s47_s1 + $0x8] sm:$0xff] %v17_v9 }

</bundles_post_ra>
